<compile_context>
chip_gen: v7x
topology: tpu7x:2x2x1
jax: 0.10.0
libtpu: 0.0.40
codegen_flags: <defaults>
</compile_context>

<pallas_src>
import functools

import jax
import jax.numpy as jnp
from jax import lax
from jax.experimental import pallas as pl
from jax.experimental.pallas import tpu as pltpu

_LANES = 128                       # lane-dense 2-D view width
_SUBLANES = 8                      # f32 sublane tile
_TILE_BYTES = 4 * 1024 * 1024      # per streamed buffer per grid step
_FUSED_BYTES = 12 * 1024 * 1024    # f32-equivalent cap for the fused path
_VMEM_LIMIT = 48 * 1024 * 1024     # < v7x 64 MiB physical VMEM


# --------------------------------------------------------------------------- #
# Kernels
# --------------------------------------------------------------------------- #
def _fused_kernel(mm_ref, x_ref, out_ref, new_mm_ref, *, num_bits, momentum,
                  training):
    """Single-block fused path: min/max + momentum + scale + fake-quantize.

    mm_ref     : SMEM (2,) f32          running [min, max] buffer (input)
    x_ref      : VMEM (rows, LANES)     whole activation
    out_ref    : VMEM (rows, LANES)     quantized activation
    new_mm_ref : SMEM (2,) f32          updated running [min, max]
    """
    x = x_ref[...].astype(jnp.float32)
    mm0 = mm_ref[0]
    mm1 = mm_ref[1]
    if training:                                   # static Python flag
        x_min = jnp.min(x)
        x_max = jnp.max(x)
        is_init = mm0 == mm1
        mm0 = jnp.where(is_init, x_min, mm0)
        mm1 = jnp.where(is_init, x_max, mm1)
        mm0 = mm0 * momentum + x_min * (1.0 - momentum)
        mm1 = mm1 * momentum + x_max * (1.0 - momentum)
    new_mm_ref[0] = mm0
    new_mm_ref[1] = mm1

    q_range = float(2 ** num_bits)
    max_input = jnp.maximum(jnp.abs(mm0), mm1)
    scale = 2.0 * max_input / q_range
    # Guard scale == 0 (all-zero activations / zero eval buffer): PyTorch would
    # produce NaN here; we return zeros for that degenerate case instead.
    inv_scale = 1.0 / jnp.where(scale > 0.0, scale, jnp.float32(1.0))
    q = jnp.clip(jnp.round(x * inv_scale), -q_range / 2.0, q_range / 2.0 - 1.0)
    out_ref[...] = (q * scale).astype(out_ref.dtype)


def _partial_minmax_kernel(x_ref, pmin_ref, pmax_ref, *, valid_rows, needs_mask):
    """Per-tile partial min/max (streaming pass 1, megacore-parallel).

    x_ref    : VMEM (TILE_R, LANES)   activation tile
    pmin_ref : VMEM (8, LANES)        this tile's min, sublane-broadcast
    pmax_ref : VMEM (8, LANES)        this tile's max, sublane-broadcast
    """
    x = x_ref[...].astype(jnp.float32)
    if needs_mask:
        # Ragged last row-tile: out-of-range rows contain garbage from the
        # clipped input DMA; neutralize them with +/-inf.
        row = (pl.program_id(0) * x.shape[0]
               + lax.broadcasted_iota(jnp.int32, x.shape, 0))
        ok = row < valid_rows
        xmin = jnp.where(ok, x, jnp.inf)
        xmax = jnp.where(ok, x, -jnp.inf)
    else:
        xmin = x
        xmax = x
    pmin = jnp.min(xmin, axis=0, keepdims=True)          # (1, LANES) XLU reduce
    pmax = jnp.max(xmax, axis=0, keepdims=True)
    pmin_ref[...] = jnp.broadcast_to(pmin, pmin_ref.shape)
    pmax_ref[...] = jnp.broadcast_to(pmax, pmax_ref.shape)


def _quantize_kernel(scale_ref, x_ref, out_ref, *, num_bits):
    """Streaming pass 2: out = clip(round(x * inv_scale)) * scale.

    scale_ref : SMEM (2,) f32   [scale, inv_scale]  (hoisted reciprocal)
    x_ref     : VMEM (TILE_R, LANES)
    out_ref   : VMEM (TILE_R, LANES)
    """
    scale = scale_ref[0]
    inv_scale = scale_ref[1]
    q_half = float(2 ** num_bits) / 2.0
    x = x_ref[...].astype(jnp.float32)
    q = jnp.clip(jnp.round(x * inv_scale), -q_half, q_half - 1.0)
    out_ref[...] = (q * scale).astype(out_ref.dtype)


# --------------------------------------------------------------------------- #
# Wrapper
# --------------------------------------------------------------------------- #
def quant_act(x, x_min_max, num_bits=8, act_range_momentum=0.95, training=True,
              tile_bytes=_TILE_BYTES, fused_bytes=_FUSED_BYTES):
    """JAX/Pallas equivalent of QuantAct.forward (symmetric quant_mode).

    Returns (x_q, new_x_min_max).  (The PyTorch module updates its
    register_buffer in place; here the updated buffer is returned.)"""
    orig_shape = x.shape
    total = int(x.size)
    num_bits = int(num_bits)
    momentum = float(act_range_momentum)
    mm = jnp.asarray(x_min_max, jnp.float32).reshape(2)

    # Lane-dense (rows, 128) view.  Lane-aligned totals reshape for free (no
    # HBM copy); only non-lane-aligned totals pay a small edge-pad (pad values
    # are copies of real elements so min/max is exact; the tail is sliced off
    # the output).  Rows are NEVER rounded up to a tile multiple — ragged row
    # tiles are handled in-kernel instead.
    pad = 0 if total % _LANES == 0 else (-total) % (_SUBLANES * _LANES)
    x_flat = x.reshape(-1)
    if pad:
        # TODO(synk): for huge non-lane-aligned tensors this pad is one extra
        # HBM copy; in practice it only triggers for small/odd activations.
        x_flat = jnp.pad(x_flat, (0, pad), mode="edge")
    rows = (total + pad) // _LANES
    x2d = x_flat.reshape(rows, _LANES)

    if (total + pad) * 4 <= fused_bytes:
        # ------------------ fused single-block fast path -------------------- #
        out2d, new_mm = pl.pallas_call(
            functools.partial(_fused_kernel, num_bits=num_bits,
                              momentum=momentum, training=bool(training)),
            in_specs=[
                pl.BlockSpec(memory_space=pltpu.MemorySpace.SMEM),   # buffer
                pl.BlockSpec(memory_space=pltpu.MemorySpace.VMEM),   # x (whole)
            ],
            out_specs=(
                pl.BlockSpec(memory_space=pltpu.MemorySpace.VMEM),   # x_q
                pl.BlockSpec(memory_space=pltpu.MemorySpace.SMEM),   # new buffer
            ),
            out_shape=(
                jax.ShapeDtypeStruct((rows, _LANES), x.dtype),
                jax.ShapeDtypeStruct((2,), jnp.float32),
            ),
            compiler_params=pltpu.CompilerParams(vmem_limit_bytes=_VMEM_LIMIT),
        )(mm, x2d)
    else:
        # ---------------------- streaming two-pass path --------------------- #
        itemsize = x2d.dtype.itemsize
        tile_r = max(_SUBLANES,
                     (tile_bytes // (_LANES * itemsize)) // _SUBLANES * _SUBLANES)
        if tile_r > rows:
            tile_r = max(_SUBLANES, rows // _SUBLANES * _SUBLANES)
        n_tiles = pl.cdiv(rows, tile_r)

        if training:
            # pass 1: per-tile partial min/max, parallel across TensorCores.
            pmin, pmax = pl.pallas_call(
                functools.partial(_partial_minmax_kernel, valid_rows=rows,
                                  needs_mask=(rows % tile_r != 0)),
                grid=(n_tiles,),
                in_specs=[pl.BlockSpec((tile_r, _LANES), lambda i: (i, 0))],
                out_specs=(
                    pl.BlockSpec((_SUBLANES, _LANES), lambda i: (i, 0)),
                    pl.BlockSpec((_SUBLANES, _LANES), lambda i: (i, 0)),
                ),
                out_shape=(
                    jax.ShapeDtypeStruct((n_tiles * _SUBLANES, _LANES),
                                         jnp.float32),
                    jax.ShapeDtypeStruct((n_tiles * _SUBLANES, _LANES),
                                         jnp.float32),
                ),
                compiler_params=pltpu.CompilerParams(
                    dimension_semantics=("parallel",),
                    vmem_limit_bytes=_VMEM_LIMIT),
            )(x2d)
            # Final combine + momentum update: one tiny fused XLA op (the fused
            # fast path above covers the common case with zero inter-pass work).
            x_min = jnp.min(pmin)
            x_max = jnp.max(pmax)
            is_init = mm[0] == mm[1]
            mm0 = jnp.where(is_init, x_min, mm[0])
            mm1 = jnp.where(is_init, x_max, mm[1])
            mm0 = mm0 * momentum + x_min * (1.0 - momentum)
            mm1 = mm1 * momentum + x_max * (1.0 - momentum)
        else:
            mm0, mm1 = mm[0], mm[1]
        new_mm = jnp.stack([mm0, mm1])

        q_range = float(2 ** num_bits)
        max_input = jnp.maximum(jnp.abs(mm0), mm1)
        scale = 2.0 * max_input / q_range
        inv_scale = 1.0 / jnp.where(scale > 0.0, scale, jnp.float32(1.0))
        scales = jnp.stack([scale, inv_scale]).astype(jnp.float32)

        # pass 2: tiled, pipelined, parallel fake-quantize.
        out2d = pl.pallas_call(
            functools.partial(_quantize_kernel, num_bits=num_bits),
            grid=(n_tiles,),
            in_specs=[
                pl.BlockSpec(memory_space=pltpu.MemorySpace.SMEM),  # [s, 1/s]
                pl.BlockSpec((tile_r, _LANES), lambda i: (i, 0)),   # x tile
            ],
            out_specs=pl.BlockSpec((tile_r, _LANES), lambda i: (i, 0)),
            out_shape=jax.ShapeDtypeStruct((rows, _LANES), x.dtype),
            compiler_params=pltpu.CompilerParams(
                dimension_semantics=("parallel",),
                vmem_limit_bytes=_VMEM_LIMIT),
        )(scales, x2d)

    out_flat = out2d.reshape(-1)
    if pad:
        out_flat = out_flat[:total]
    return out_flat.reshape(orig_shape), new_mm


# --------------------------------------------------------------------------- #
# Pure-JAX reference of the PyTorch forward (same hoisted-reciprocal form)
# --------------------------------------------------------------------------- #
def _reference_quant_act(x, x_min_max, num_bits, momentum, training=True):
    x = x.astype(jnp.float32)
    mm0 = x_min_max[0].astype(jnp.float32)
    mm1 = x_min_max[1].astype(jnp.float32)
    if training:
        x_min, x_max = jnp.min(x), jnp.max(x)
        is_init = mm0 == mm1
        mm0 = jnp.where(is_init, x_min, mm0)
        mm1 = jnp.where(is_init, x_max, mm1)
        mm0 = mm0 * momentum + x_min * (1.0 - momentum)
        mm1 = mm1 * momentum + x_max * (1.0 - momentum)
    q_range = float(2 ** num_bits)
    max_input = jnp.maximum(jnp.abs(mm0), mm1)
    scale = 2.0 * max_input / q_range
    inv_scale = 1.0 / jnp.where(scale > 0.0, scale, jnp.float32(1.0))
    out = (jnp.clip(jnp.round(x * inv_scale), -(q_range / 2.0), q_range / 2.0 - 1.0)
           * scale)
    return out, jnp.stack([mm0, mm1])


def _check(x, buf, num_bits, momentum, training, **kw):
    x_q, new_mm = quant_act(x, buf, num_bits=num_bits,
                            act_range_momentum=momentum, training=training, **kw)
    x_q = jax.block_until_ready(x_q)
    new_mm = jax.block_until_ready(new_mm)
    ref_q, ref_mm = _reference_quant_act(x, buf, num_bits, momentum, training)
    assert x_q.shape == x.shape and x_q.dtype == x.dtype
    assert jnp.allclose(x_q, ref_q, atol=1e-5, rtol=1e-5)
    assert jnp.allclose(new_mm, ref_mm, atol=1e-5, rtol=1e-5)
    return new_mm


if __name__ == "__main__":
    key = jax.random.PRNGKey(0)
    k1, k2, k3, k4 = jax.random.split(key, 4)
    num_bits = 8
    momentum = 0.95
    zero_buf = jnp.zeros((2,), dtype=jnp.float32)

    # 1) Typical NCHW activation, fresh (zero) buffer -> fused single-block path.
    x1 = jax.random.normal(k1, (2, 4, 16, 16), dtype=jnp.float32)
    mm1 = _check(x1, zero_buf, num_bits, momentum, training=True)

    # 2) Eval mode with the updated running range (buffer fixed) -> fused path.
    _check(x1, mm1, num_bits, momentum, training=False)

    # 3) Odd element count (exercises the edge-pad fallback) -> fused path.
    x2 = jax.random.normal(k2, (3, 5, 7, 11), dtype=jnp.float32)
    _check(x2, jnp.array([-1.5, 2.0], dtype=jnp.float32), num_bits, momentum,
           training=True)

    # 4) Force the streaming two-pass path with an evenly-divided grid
    #    (4 row-tiles; exercises the parallel partial-min/max reduction).
    x3 = jax.random.normal(k3, (2, 4, 64, 64), dtype=jnp.float32)
    _check(x3, zero_buf, num_bits, momentum, training=True,
           tile_bytes=64 * _LANES * 4, fused_bytes=0)

    # 5) Streaming path with a ragged last row-tile (121 rows -> 64 + 57),
    #    exercising in-kernel row masking and clipped boundary DMA.
    x4 = jax.random.normal(k4, (11, 11, 128), dtype=jnp.float32)
    _check(x4, zero_buf, num_bits, momentum, training=True,
           tile_bytes=64 * _LANES * 4, fused_bytes=0)

    print("KERNEL_OK")
</pallas_src>

<mosaic_0001>
module attributes {stable_mosaic.version = 11 : i64} {
  func.func @_fused_kernel(%arg0: memref<2xf32, #tpu.memory_space<smem>>, %arg1: memref<16x128xf32, #tpu.memory_space<vmem>>, %arg2: memref<16x128xf32, #tpu.memory_space<vmem>>, %arg3: memref<2xf32, #tpu.memory_space<smem>>) attributes {dimension_semantics = [], scalar_prefetch = 0 : i64, scratch_operands = 0 : i64, tpu.core_type = #tpu.core_type<tc>} {
    %c0 = arith.constant 0 : index
    %c0_0 = arith.constant 0 : index
    %0 = vector.load %arg1[%c0, %c0_0] : memref<16x128xf32, #tpu.memory_space<vmem>>, vector<16x128xf32>
    %c0_1 = arith.constant 0 : index
    %1 = memref.load %arg0[%c0_1] : memref<2xf32, #tpu.memory_space<smem>>
    %c1 = arith.constant 1 : index
    %2 = memref.load %arg0[%c1] : memref<2xf32, #tpu.memory_space<smem>>
    %3 = vector.shape_cast %0 : vector<16x128xf32> to vector<1x16x128xf32>
    %cst = arith.constant dense<0x7F800000> : vector<1xf32>
    %4 = vector.multi_reduction <minimumf>, %3, %cst [1, 2] : vector<1x16x128xf32> to vector<1xf32>
    %5 = vector.shape_cast %4 : vector<1xf32> to vector<1x1x1xf32>
    %6 = vector.extract %5[0, 0, 0] : f32 from vector<1x1x1xf32>
    %7 = vector.shape_cast %0 : vector<16x128xf32> to vector<1x16x128xf32>
    %cst_2 = arith.constant dense<0xFF800000> : vector<1xf32>
    %8 = vector.multi_reduction <maximumf>, %7, %cst_2 [1, 2] : vector<1x16x128xf32> to vector<1xf32>
    %9 = vector.shape_cast %8 : vector<1xf32> to vector<1x1x1xf32>
    %10 = vector.extract %9[0, 0, 0] : f32 from vector<1x1x1xf32>
    %11 = arith.cmpf oeq, %1, %2 : f32
    %12 = arith.select %11, %6, %1 : f32
    %13 = arith.select %11, %10, %2 : f32
    %cst_3 = arith.constant 0.949999988 : f32
    %14 = arith.mulf %12, %cst_3 : f32
    %cst_4 = arith.constant 5.000000e-02 : f32
    %15 = arith.mulf %6, %cst_4 : f32
    %16 = arith.addf %14, %15 : f32
    %cst_5 = arith.constant 0.949999988 : f32
    %17 = arith.mulf %13, %cst_5 : f32
    %cst_6 = arith.constant 5.000000e-02 : f32
    %18 = arith.mulf %10, %cst_6 : f32
    %19 = arith.addf %17, %18 : f32
    %c0_7 = arith.constant 0 : index
    %20 = memref.load %arg3[%c0_7] : memref<2xf32, #tpu.memory_space<smem>>
    memref.store %16, %arg3[%c0_7] : memref<2xf32, #tpu.memory_space<smem>>
    %c1_8 = arith.constant 1 : index
    %21 = memref.load %arg3[%c1_8] : memref<2xf32, #tpu.memory_space<smem>>
    memref.store %19, %arg3[%c1_8] : memref<2xf32, #tpu.memory_space<smem>>
    %22 = math.absf %16 : f32
    %23 = arith.maximumf %22, %19 : f32
    %cst_9 = arith.constant 2.000000e+00 : f32
    %24 = arith.mulf %cst_9, %23 : f32
    %cst_10 = arith.constant 2.560000e+02 : f32
    %25 = arith.divf %24, %cst_10 : f32
    %cst_11 = arith.constant 0.000000e+00 : f32
    %26 = arith.cmpf ogt, %25, %cst_11 : f32
    %cst_12 = arith.constant 1.000000e+00 : f32
    %27 = arith.select %26, %25, %cst_12 : f32
    %cst_13 = arith.constant 1.000000e+00 : f32
    %28 = arith.divf %cst_13, %27 : f32
    %29 = vector.broadcast %28 : f32 to vector<16x128xf32>
    %30 = arith.mulf %0, %29 : vector<16x128xf32>
    %31 = math.roundeven %30 : vector<16x128xf32>
    %cst_14 = arith.constant -1.280000e+02 : f32
    %cst_15 = arith.constant 1.270000e+02 : f32
    %32 = vector.broadcast %cst_14 : f32 to vector<16x128xf32>
    %33 = arith.maximumf %32, %31 : vector<16x128xf32>
    %34 = vector.broadcast %cst_15 : f32 to vector<16x128xf32>
    %35 = arith.minimumf %34, %33 : vector<16x128xf32>
    %36 = vector.broadcast %25 : f32 to vector<16x128xf32>
    %37 = arith.mulf %35, %36 : vector<16x128xf32>
    %c0_16 = arith.constant 0 : index
    %c0_17 = arith.constant 0 : index
    %38 = vector.load %arg2[%c0_16, %c0_17] : memref<16x128xf32, #tpu.memory_space<vmem>>, vector<16x128xf32>
    tpu.vector_store %arg2[%c0_16, %c0_17], %37 {strides = array<i32>} : memref<16x128xf32, #tpu.memory_space<vmem>>, vector<16x128xf32>,
    return
  }
}

</mosaic_0001>

<bundles_post_ra>
// kernel: tpu_custom_call.1
= control target key start
LH: loop header
LB: loop body
LE: loop exit
PB: predicated region body
PF: predicated region fallthrough
CT: control target
= control target key end

     0   :  { %9 = vsyncpa [#allocation5], 0  ;;  %s302_s0 = inlined_call_operand.hbm [shape: f32[2], index: 0, kind: input, shape index: {}]   ;;  %s303_s1 = inlined_call_operand.hbm [shape: f32[16,128], index: 1, kind: input, shape index: {}]   ;;  %s304_s2 = inlined_call_operand.hbm [shape: f32[16,128], index: 2, kind: output, shape index: {0}]   ;;  %s305_s3 = inlined_call_operand.hbm [shape: f32[2], index: 3, kind: output, shape index: {1}]  }
   0x1   :  { %10 = vsyncpa [#allocation3], 0 }
   0x2   :  { %11 = vsyncpa [#allocation4], 0 }
   0x3   :  { %12 = vsyncpa [#allocation6], 0  ;;  %s150_s14 = scalar_lea.hbm %s302_s0, 16 }
   0x4   :  { %p151_p0 = scmp.ne.s32.totalorder %s302_s0, %s150_s14  ;;  %p154_p1 = scmp.lt.u32.totalorder %s150_s14, %s302_s0 }
   0x6   :  { %p156_p2 = pnand %p154_p1, %p151_p0 }
   0x8   :  { %159 = shalt.err (!%p156_p2)
}
   0x9   :  { %s222_s19 = smov [#allocation2]   ;;  %s223_s22 = smov [#allocation7]  }
   0xa   :  { %20 = dma.hbm_to_smem %s302_s0, 16, %s222_s19, [#allocation5]  }
   0xb   :  { %s26_s23 = sshll.u32 %s223_s22, 4  ;;  %s160_s26 = scalar_lea.hbm %s303_s1, 256  ;;  %s27_s23 = int_to_ptr.vmem [resolvable:$true] %s26_s23 }
   0xc   :  { %p161_p3 = scmp.ne.s32.totalorder %s303_s1, %s160_s26  ;;  %p164_p4 = scmp.lt.u32.totalorder %s160_s26, %s303_s1 }
   0xe   :  { %p166_p5 = pnand %p164_p4, %p161_p3 }
  0x10   :  { %169 = shalt.err (!%p166_p5)
}
  0x11   :  { %s170_s4 = scalar_lea.vmem %s27_s23, 256  ;;  %p175_p7 = scmp.lt.s32.totalorder %s27_s23, %s27_s23 }
  0x12   :  { %p171_p6 = scmp.ne.s32.totalorder %s27_s23, %s170_s4  ;;  %p176_p8 = scmp.lt.s32.totalorder %s170_s4, %s170_s4 }
  0x14   :  { %p177_p9 = por %p176_p8, %p175_p7 }
  0x16   :  { %p178_p10 = pnand %p177_p9, %p171_p6 }
  0x18   :  { %181 = shalt.err (!%p178_p10)
}
  0x19   :  { %s224_s0 = smov 128   ;;  %s225_s5 = smov 8  }
  0x1a   :  { %32 = dma.hbm_to_vmem [thread:$0]  %s303_s1, 256, %s27_s23, [#allocation3], %s224_s0, %s224_s0, %s225_s5  }
  0x1b   :  { %214 = dma.done.wait [#allocation5], 16  }
  0x1c   :  { %215 = vsyncadd [#allocation5], 4294967280 }
  0x1d   :  { %216 = dma.done.wait [#allocation3], 256  }
  0x1e   :  { %217 = vsyncadd [#allocation3], 4294967040 }
  0x1f   :  { %39 = sfence }
  0x20   :  { %v40_v0 = vld [vmem:[#allocation7] sm:$0xff]  ;;  %v41_v1 = vld [vmem:[#allocation7 + $0x8] sm:$0xff]  ;;  %s42_s1 = sld [smem:[#allocation2]]  ;;  %s133_s8 = sld [smem:[#allocation2 + $0x1]] }
  0x21   :  { %v44_v2 = vmin.f32 %v40_v0, %v41_v1  ;;  %v54_v3 = vmax.f32 %v40_v0, %v41_v1  ;;  %s182_s24 = scalar_lea.hbm %s305_s3, 16 }
  0x22   :  { %p183_p12 = scmp.ne.s32.totalorder %s305_s3, %s182_s24  ;;  %p186_p13 = scmp.lt.u32.totalorder %s182_s24, %s305_s3 }
  0x23   :  { %45 = vmin.xlane.f32.xlu0 %v44_v2 }
  0x24   :  { %p188_p0 = pnand %p186_p13, %p183_p12 }
  0x26   :  { %p64_p11 = scmp.eq.f32.partialorder %s42_s1, %s133_s8 }
  0x27   :  { %55 = vmax.xlane.f32.xlu0 %v54_v3 }
  0xb0   :  { %v46_v4 = vpop.xlane.xlu0 %45 }
  0xb1   :  { %v47_v5 = vrot.slane %v46_v4, 4 }
  0xb3   :  { %v48_v6 = vmin.f32 %v46_v4, %v47_v5 }
  0xb4   :  { %v56_v7 = vpop.xlane.xlu0 %55 }
  0xb5   :  { %v49_v8 = vrot.slane %v48_v6, 2  ;;  %v57_v9 = vrot.slane %v56_v7, 4 }
  0xb7   :  { %v58_v10 = vmax.f32 %v56_v7, %v57_v9  ;;  %v50_v11 = vmin.f32 %v48_v6, %v49_v8 }
  0xb9   :  { %v59_v12 = vrot.slane %v58_v10, 2  ;;  %v51_v13 = vrot.slane %v50_v11, 1 }
  0xbb   :  { %v60_v14 = vmax.f32 %v58_v10, %v59_v12  ;;  %v52_v15 = vmin.f32 %v50_v11, %v51_v13 }
  0xbd   :  { %134 = vpush %v52_v15  ;;  %v61_v16 = vrot.slane %v60_v14, 1 }
  0xbf   :  { %v62_v17 = vmax.f32 %v60_v14, %v61_v16 }
  0xc1   :  { %136 = vpush %v62_v17 }
  0xee   :  { %s135_s9 = spop %134 }
  0xef   :  { %s65_s10 = scalar_select %p64_p11, %s135_s9, %s42_s1 }
  0xf0   :  { %s68_s11 = smul.f32 0.05, %s135_s9 }
  0xf1   :  { %s67_s12 = smul.f32 0.95, %s65_s10 }
  0xf2   :  { %s137_s13 = spop %136 }
  0xf3   :  { %s69_s14 = sadd.f32 %s68_s11, %s67_s12  ;;  %s71_s16 = smul.f32 0.05, %s137_s13 }
  0xf4   :  { %s66_s15 = scalar_select %p64_p11, %s137_s13, %s133_s8 }
  0xf5   :  { %74 = sst [smem:[#allocation9]] %s69_s14  ;;  %s77_s19 = sand.u32 2147483647, %s69_s14 }
  0xf6   :  { %s70_s17 = smul.f32 0.95, %s66_s15 }
  0xf8   :  { %s72_s18 = sadd.f32 %s71_s16, %s70_s17 }
  0xfa   :  { %s78_s20 = smax.f32 %s77_s19, %s72_s18  ;;  %76 = sst [smem:[#allocation9 + $0x1]] %s72_s18 }
  0xfb   :  { %s79_s21 = smul.f32 2.0, %s78_s20 }
  0xfc   :  { %191 = shalt.err (!%p188_p0)
}
  0xfd   :  { %s226_s29 = smov [#allocation9]   ;;  %s82_s6 = smul.f32 0.00390625, %s79_s21 }
  0xfe   :  { %121 = dma.smem_to_hbm %s226_s29, 16, %s305_s3, [#allocation6]  }
  0xff   :  { %p83_p1 = scmp.gt.f32.partialorder %s82_s6, 0.0  ;;  %s227_s8 = smov [#allocation8]   ;;  %v97_v29 = vstv %s82_s6 }
 0x100   :  { %s107_s9 = sshll.u32 %s227_s8, 4  ;;  %s108_s9 = int_to_ptr.vmem [resolvable:$true] %s107_s9 }
 0x101   :  { %s84_s7 = scalar_select %p83_p1, %s82_s6, 1.0 }
 0x102   :  { %s192_s3 = scalar_lea.vmem %s108_s9, 256  ;;  %p197_p3 = scmp.lt.s32.totalorder %s108_s9, %s108_s9 }
 0x103   :  { %v85_v18 = vstv %s84_s7  ;;  %p193_p2 = scmp.ne.s32.totalorder %s108_s9, %s192_s3  ;;  %p198_p4 = scmp.lt.s32.totalorder %s192_s3, %s192_s3 }
 0x104   :  { %148 = vrcp.f32 %v85_v18 }
 0x105   :  { %p199_p5 = por %p198_p4, %p197_p3 }
 0x107   :  { %p200_p6 = pnand %p199_p5, %p193_p2 }
 0x10e   :  { %v149_v19 = vpop.eup %148 }
 0x10f   :  { %138 = vpush %v149_v19 }
 0x140   :  { %s139_s1 = spop %138 }
 0x141   :  { %v88_v20 = vstv %s139_s1 }
 0x142   :  { %v89_v21 = vmul.f32 %v88_v20, %v40_v0  ;;  %v90_v22 = vmul.f32 %v88_v20, %v41_v1 }
 0x144   :  { %v140_v23 = vround.rtne.f32 %v89_v21  ;;  %v141_v24 = vround.rtne.f32 %v90_v22 }
 0x146   :  { %v93_v25 = vmax.f32 %v140_v23, -128.0  ;;  %v94_v26 = vmax.f32 %v141_v24, -128.0 }
 0x148   :  { %v95_v27 = vmin.f32 %v93_v25, 127.0  ;;  %v96_v28 = vmin.f32 %v94_v26, 127.0 }
 0x14a   :  { %v98_v30 = vmul.f32 %v97_v29, %v95_v27  ;;  %v99_v31 = vmul.f32 %v97_v29, %v96_v28 }
 0x14c   :  { %100 = vst [vmem:[#allocation8] sm:$0xff] %v98_v30  ;;  %101 = vst [vmem:[#allocation8 + $0x8] sm:$0xff] %v99_v31 }
 0x14d   :  { %203 = shalt.err (!%p200_p6)
}
 0x14e   :  { %s204_s12 = scalar_lea.hbm %s304_s2, 256 }
 0x14f   :  { %p205_p7 = scmp.ne.s32.totalorder %s304_s2, %s204_s12  ;;  %p208_p8 = scmp.lt.u32.totalorder %s204_s12, %s304_s2 }
 0x151   :  { %p210_p9 = pnand %p208_p8, %p205_p7 }
 0x153   :  { %213 = shalt.err (!%p210_p9)
}
 0x154   :  { %113 = dma.vmem_to_hbm [thread:$0]  %s108_s9, 256, %s304_s2, [#allocation4], %s224_s0, %s224_s0, %s225_s5  }
 0x155   :  { %218 = dma.done.wait [#allocation4], 256  }
 0x156   :  { %219 = vsyncadd [#allocation4], 4294967040 }
 0x157   :  { %220 = dma.done.wait [#allocation6], 16  }
 0x158   :  { %221 = vsyncadd [#allocation6], 4294967280 }
 0x159   :  { %128 = sfence }
 0x15a   :  { %129 = vsyncpa [#allocation3], 1 }
 0x15b   :  { %130 = vsyncpa [#allocation4], 1 }
 0x15c   :  { %131 = vsyncpa [#allocation5], 1 }
 0x15d   :  { %132 = vsyncpa [#allocation6], 1 }

</bundles_post_ra>
